<compile_context>
chip_gen: v5e
topology: v5e:2x2
jax: 0.10.0
libtpu: 0.0.40
codegen_flags: <defaults>
</compile_context>

<pallas_src>
import math

import jax
import jax.numpy as jnp
from jax import lax
from jax.experimental import pallas as pl
from jax.experimental.pallas import tpu as pltpu

LN_EPS = 1e-5          # nn.LayerNorm default eps
LEAKY_SLOPE = 0.01     # nn.LeakyReLU default negative_slope
LANE = 128
MAX_ROW_TILE = 4096
TILE_VMEM_BUDGET = 28 * 1024 * 1024   # streamed-block budget (fits v7x 64 MiB/TC)
VMEM_LIMIT_BYTES = 48 * 1024 * 1024   # scoped-VMEM limit: > v5e/v6e defaults,
                                      # < v7x physical VMEM


def _cdiv(a, b):
    return -(-a // b)


def projector_kernel(x_ref, w1_ref, b1_ref, w2_ref, b2_ref, g_ref, beta_ref,
                     o_ref):
    # x_ref: (tn, d_model) f32, natural row-major layout.
    # Cast to bf16 in VMEM (VPU) for the MXU; no extra HBM pass.
    xb = x_ref[...].astype(jnp.bfloat16)

    # Linear(d_model, d_model//2): contract d_model of W1 (axis 1) against
    # d_model of the x tile (axis 1) -> feature-major (hidden, tn), f32 acc.
    h = lax.dot_general(w1_ref[...], xb, (((1,), (1,)), ((), ())),
                        preferred_element_type=jnp.float32)
    h = h + b1_ref[...]

    # LeakyReLU fused with the bf16 cast feeding the second MXU pass.
    hb = jnp.where(h >= 0.0, h, LEAKY_SLOPE * h).astype(jnp.bfloat16)

    # Linear(d_model//2, 2*action_dim) -> (out_dim, tn), f32 acc.
    z = jnp.dot(w2_ref[...], hb, preferred_element_type=jnp.float32)
    z = z + b2_ref[...]

    # LayerNorm over the feature axis (axis 0 in this layout), biased variance
    # like torch; (z - mu) reused for the variance, rsqrt lands on the EUP.
    mu = jnp.mean(z, axis=0, keepdims=True)
    d = z - mu
    var = jnp.mean(d * d, axis=0, keepdims=True)
    y = d * lax.rsqrt(var + LN_EPS)
    o_ref[...] = (y * g_ref[...] + beta_ref[...]).astype(o_ref.dtype)


def _row_tile(n_rows, d_model, hidden, out_dim):
    """Row-tile size derived from the VMEM budget, balanced over n_rows."""
    bytes_per_row = (2 * d_model * 4        # x tile, double-buffered, f32
                     + hidden * (4 + 2)     # h (f32) + hb (bf16)
                     + 2 * out_dim * 4)     # out tile, double-buffered, f32
    cap = TILE_VMEM_BUDGET // bytes_per_row
    cap = max(LANE, min(MAX_ROW_TILE, (cap // LANE) * LANE))
    if n_rows <= cap:
        return n_rows                       # single tile, no row padding
    n_tiles = _cdiv(n_rows, cap)
    return _cdiv(_cdiv(n_rows, n_tiles), LANE) * LANE


def _compiler_params():
    cp_cls = (getattr(pltpu, "CompilerParams", None)
              or getattr(pltpu, "TPUCompilerParams", None))
    if cp_cls is None:
        return None
    # "parallel" row axis: no-op on 1-TC chips, shardable on multi-core parts.
    return cp_cls(dimension_semantics=("parallel",),
                  vmem_limit_bytes=VMEM_LIMIT_BYTES)


@jax.jit
def stochastic_projector_forward(x, params):
    """x: (..., d_model) -> (..., 2*action_dim), matching StochasticProjector."""
    w1, b1, w2, b2, gamma, beta = params
    d_model = x.shape[-1]
    hidden = w1.shape[0]
    out_dim = w2.shape[0]
    lead = x.shape[:-1]
    n = math.prod(lead) if lead else 1

    tn = _row_tile(n, d_model, hidden, out_dim)
    n_pad = _cdiv(n, tn) * tn

    x2 = x.reshape(n, d_model)
    if n_pad != n:
        # Only the remainder of the last (balanced) tile is padded.
        x2 = jnp.pad(x2, ((0, n_pad - n), (0, 0)))

    out_t = pl.pallas_call(
        projector_kernel,
        out_shape=jax.ShapeDtypeStruct((out_dim, n_pad), jnp.float32),
        grid=(n_pad // tn,),
        in_specs=[
            # streamed row tiles of x, natural (rows, d_model) layout
            pl.BlockSpec((tn, d_model), lambda i: (i, 0)),
            # weights / biases: constant index_map -> VMEM-resident across steps
            pl.BlockSpec((hidden, d_model), lambda i: (0, 0)),
            pl.BlockSpec((hidden, 1), lambda i: (0, 0)),
            pl.BlockSpec((out_dim, hidden), lambda i: (0, 0)),
            pl.BlockSpec((out_dim, 1), lambda i: (0, 0)),
            pl.BlockSpec((out_dim, 1), lambda i: (0, 0)),
            pl.BlockSpec((out_dim, 1), lambda i: (0, 0)),
        ],
        out_specs=pl.BlockSpec((out_dim, tn), lambda i: (0, i)),
        compiler_params=_compiler_params(),
    )(x2, w1, b1, w2, b2, gamma, beta)

    return out_t.T[:n].reshape(*lead, out_dim)


def kaiming_uniform_leaky_relu(key, out_features, in_features):
    # torch.nn.init.kaiming_uniform_(w, nonlinearity='leaky_relu'): a=0 ->
    # gain = sqrt(2), bound = gain * sqrt(3 / fan_in)
    bound = math.sqrt(2.0) * math.sqrt(3.0 / in_features)
    return jax.random.uniform(key, (out_features, in_features),
                              minval=-bound, maxval=bound, dtype=jnp.float32)


def init_params(key, d_model, action_dim):
    """Mirrors StochasticProjector.init_weights(); weights kept (out, in)
    because the kernel contracts W against the row-major x tile."""
    hidden = d_model // 2
    out_dim = 2 * action_dim
    k1, k2 = jax.random.split(key)
    w1 = kaiming_uniform_leaky_relu(k1, hidden, d_model).astype(jnp.bfloat16)
    b1 = jnp.zeros((hidden, 1), jnp.float32)
    w2 = kaiming_uniform_leaky_relu(k2, out_dim, hidden).astype(jnp.bfloat16)
    b2 = jnp.zeros((out_dim, 1), jnp.float32)
    gamma = jnp.ones((out_dim, 1), jnp.float32)   # LayerNorm weight
    beta = jnp.zeros((out_dim, 1), jnp.float32)   # LayerNorm bias
    return (w1, b1, w2, b2, gamma, beta)


def _reference(x, params):
    # Pure-JAX reference of the PyTorch forward (f32 math, same weights).
    w1, b1, w2, b2, gamma, beta = params
    h = x @ w1.astype(jnp.float32).T + b1[:, 0]
    h = jnp.where(h >= 0.0, h, LEAKY_SLOPE * h)
    h = h @ w2.astype(jnp.float32).T + b2[:, 0]
    mu = jnp.mean(h, axis=-1, keepdims=True)
    var = jnp.mean((h - mu) ** 2, axis=-1, keepdims=True)
    return (h - mu) * lax.rsqrt(var + LN_EPS) * gamma[:, 0] + beta[:, 0]


if __name__ == "__main__":
    d_model = 32
    action_dim = 4
    batch, seq = 2, 8   # transformer output: (batch, seq, d_model)

    key = jax.random.PRNGKey(0)
    k_x, k_p = jax.random.split(key)
    x = jax.random.normal(k_x, (batch, seq, d_model), dtype=jnp.float32)
    params = init_params(k_p, d_model, action_dim)

    out = stochastic_projector_forward(x, params)
    jax.block_until_ready(out)

    assert out.shape == (batch, seq, 2 * action_dim)
    ref = _reference(x, params)
    assert bool(jnp.all(jnp.isfinite(out)))
    # bf16 MXU operands vs f32 reference -> loose tolerance
    assert bool(jnp.max(jnp.abs(out - ref)) < 1e-1), "mismatch vs JAX reference"
    print("KERNEL_OK")
</pallas_src>

<mosaic_0001>
module attributes {stable_mosaic.version = 11 : i64} {
  func.func @projector_kernel(%arg0: i32, %arg1: memref<16x32xf32, #tpu.memory_space<vmem>>, %arg2: memref<16x32xbf16, #tpu.memory_space<vmem>>, %arg3: memref<16x1xf32, #tpu.memory_space<vmem>>, %arg4: memref<8x16xbf16, #tpu.memory_space<vmem>>, %arg5: memref<8x1xf32, #tpu.memory_space<vmem>>, %arg6: memref<8x1xf32, #tpu.memory_space<vmem>>, %arg7: memref<8x1xf32, #tpu.memory_space<vmem>>, %arg8: memref<8x16xf32, #tpu.memory_space<vmem>>) attributes {dimension_semantics = [#tpu.dimension_semantics<parallel>], iteration_bounds = array<i64: 1>, scalar_prefetch = 0 : i64, scratch_operands = 0 : i64, tpu.core_type = #tpu.core_type<tc>, window_params = [{transform_indices = @transform_0, window_bounds = array<i64: 16, 32>}, {pipeline_mode = #tpu.pipeline_mode<synchronous>, transform_indices = @transform_1, window_bounds = array<i64: 16, 32>}, {pipeline_mode = #tpu.pipeline_mode<synchronous>, transform_indices = @transform_2, window_bounds = array<i64: 16, 1>}, {pipeline_mode = #tpu.pipeline_mode<synchronous>, transform_indices = @transform_3, window_bounds = array<i64: 8, 16>}, {pipeline_mode = #tpu.pipeline_mode<synchronous>, transform_indices = @transform_4, window_bounds = array<i64: 8, 1>}, {pipeline_mode = #tpu.pipeline_mode<synchronous>, transform_indices = @transform_5, window_bounds = array<i64: 8, 1>}, {pipeline_mode = #tpu.pipeline_mode<synchronous>, transform_indices = @transform_6, window_bounds = array<i64: 8, 1>}, {transform_indices = @transform_7, window_bounds = array<i64: 8, 16>}]} {
    %c0 = arith.constant 0 : index
    %c0_0 = arith.constant 0 : index
    %0 = vector.load %arg1[%c0, %c0_0] : memref<16x32xf32, #tpu.memory_space<vmem>>, vector<16x32xf32>
    %1 = arith.truncf %0 : vector<16x32xf32> to vector<16x32xbf16>
    %c0_1 = arith.constant 0 : index
    %c0_2 = arith.constant 0 : index
    %2 = vector.load %arg2[%c0_1, %c0_2] : memref<16x32xbf16, #tpu.memory_space<vmem>>, vector<16x32xbf16>
    %cst = arith.constant dense<0.000000e+00> : vector<16x16xf32>
    %3 = tpu.matmul %2, %1, %cst {dimension_numbers = #tpu.dot_dimension_numbers<[1], [1], [0], [0], [0, 0, 1, 0], [], []>} : vector<16x32xbf16>, vector<16x32xbf16>, vector<16x16xf32> -> vector<16x16xf32>
    %c0_3 = arith.constant 0 : index
    %c0_4 = arith.constant 0 : index
    %4 = vector.load %arg3[%c0_3, %c0_4] : memref<16x1xf32, #tpu.memory_space<vmem>>, vector<16x1xf32>
    %5 = vector.broadcast %4 : vector<16x1xf32> to vector<16x16xf32>
    %6 = arith.addf %3, %5 : vector<16x16xf32>
    %cst_5 = arith.constant 0.000000e+00 : f32
    %7 = vector.broadcast %cst_5 : f32 to vector<16x16xf32>
    %8 = arith.cmpf oge, %6, %7 : vector<16x16xf32>
    %cst_6 = arith.constant 0.00999999977 : f32
    %9 = vector.broadcast %cst_6 : f32 to vector<16x16xf32>
    %10 = arith.mulf %9, %6 : vector<16x16xf32>
    %11 = arith.select %8, %6, %10 : vector<16x16xi1>, vector<16x16xf32>
    %12 = arith.truncf %11 : vector<16x16xf32> to vector<16x16xbf16>
    %c0_7 = arith.constant 0 : index
    %c0_8 = arith.constant 0 : index
    %13 = vector.load %arg4[%c0_7, %c0_8] : memref<8x16xbf16, #tpu.memory_space<vmem>>, vector<8x16xbf16>
    %cst_9 = arith.constant dense<0.000000e+00> : vector<8x16xf32>
    %14 = tpu.matmul %13, %12, %cst_9 {dimension_numbers = #tpu.dot_dimension_numbers<[1], [0], [0], [1], [0, 0, 1, 1], [], []>} : vector<8x16xbf16>, vector<16x16xbf16>, vector<8x16xf32> -> vector<8x16xf32>
    %c0_10 = arith.constant 0 : index
    %c0_11 = arith.constant 0 : index
    %15 = vector.load %arg5[%c0_10, %c0_11] : memref<8x1xf32, #tpu.memory_space<vmem>>, vector<8x1xf32>
    %16 = vector.broadcast %15 : vector<8x1xf32> to vector<8x16xf32>
    %17 = arith.addf %14, %16 : vector<8x16xf32>
    %cst_12 = arith.constant dense<0.000000e+00> : vector<16xf32>
    %18 = vector.multi_reduction <add>, %17, %cst_12 [0] : vector<8x16xf32> to vector<16xf32>
    %19 = vector.shape_cast %18 : vector<16xf32> to vector<1x16xf32>
    %cst_13 = arith.constant 8.000000e+00 : f32
    %20 = vector.broadcast %cst_13 : f32 to vector<1x16xf32>
    %21 = arith.divf %19, %20 : vector<1x16xf32>
    %22 = vector.broadcast %21 : vector<1x16xf32> to vector<8x16xf32>
    %23 = arith.subf %17, %22 : vector<8x16xf32>
    %24 = arith.mulf %23, %23 : vector<8x16xf32>
    %cst_14 = arith.constant dense<0.000000e+00> : vector<16xf32>
    %25 = vector.multi_reduction <add>, %24, %cst_14 [0] : vector<8x16xf32> to vector<16xf32>
    %26 = vector.shape_cast %25 : vector<16xf32> to vector<1x16xf32>
    %cst_15 = arith.constant 8.000000e+00 : f32
    %27 = vector.broadcast %cst_15 : f32 to vector<1x16xf32>
    %28 = arith.divf %26, %27 : vector<1x16xf32>
    %cst_16 = arith.constant 9.99999974E-6 : f32
    %29 = vector.broadcast %cst_16 : f32 to vector<1x16xf32>
    %30 = arith.addf %28, %29 : vector<1x16xf32>
    %31 = math.rsqrt %30 : vector<1x16xf32>
    %32 = vector.broadcast %31 : vector<1x16xf32> to vector<8x16xf32>
    %33 = arith.mulf %23, %32 : vector<8x16xf32>
    %c0_17 = arith.constant 0 : index
    %c0_18 = arith.constant 0 : index
    %34 = vector.load %arg6[%c0_17, %c0_18] : memref<8x1xf32, #tpu.memory_space<vmem>>, vector<8x1xf32>
    %35 = vector.broadcast %34 : vector<8x1xf32> to vector<8x16xf32>
    %36 = arith.mulf %33, %35 : vector<8x16xf32>
    %c0_19 = arith.constant 0 : index
    %c0_20 = arith.constant 0 : index
    %37 = vector.load %arg7[%c0_19, %c0_20] : memref<8x1xf32, #tpu.memory_space<vmem>>, vector<8x1xf32>
    %38 = vector.broadcast %37 : vector<8x1xf32> to vector<8x16xf32>
    %39 = arith.addf %36, %38 : vector<8x16xf32>
    %c0_21 = arith.constant 0 : index
    %c0_22 = arith.constant 0 : index
    %40 = vector.load %arg8[%c0_21, %c0_22] : memref<8x16xf32, #tpu.memory_space<vmem>>, vector<8x16xf32>
    tpu.vector_store %arg8[%c0_21, %c0_22], %39 {strides = array<i32>} : memref<8x16xf32, #tpu.memory_space<vmem>>, vector<8x16xf32>,
    return
  }
  func.func @transform_0(%arg0: i32) -> (i32, i32) {
    %c0_i32 = arith.constant 0 : i32
    %c0_i32_0 = arith.constant 0 : i32
    return %arg0, %c0_i32 : i32, i32
  }
  func.func @transform_1(%arg0: i32) -> (i32, i32) {
    %c0_i32 = arith.constant 0 : i32
    %c0_i32_0 = arith.constant 0 : i32
    %c0_i32_1 = arith.constant 0 : i32
    return %c0_i32, %c0_i32_0 : i32, i32
  }
  func.func @transform_2(%arg0: i32) -> (i32, i32) {
    %c0_i32 = arith.constant 0 : i32
    %c0_i32_0 = arith.constant 0 : i32
    %c0_i32_1 = arith.constant 0 : i32
    return %c0_i32, %c0_i32_0 : i32, i32
  }
  func.func @transform_3(%arg0: i32) -> (i32, i32) {
    %c0_i32 = arith.constant 0 : i32
    %c0_i32_0 = arith.constant 0 : i32
    %c0_i32_1 = arith.constant 0 : i32
    return %c0_i32, %c0_i32_0 : i32, i32
  }
  func.func @transform_4(%arg0: i32) -> (i32, i32) {
    %c0_i32 = arith.constant 0 : i32
    %c0_i32_0 = arith.constant 0 : i32
    %c0_i32_1 = arith.constant 0 : i32
    return %c0_i32, %c0_i32_0 : i32, i32
  }
  func.func @transform_5(%arg0: i32) -> (i32, i32) {
    %c0_i32 = arith.constant 0 : i32
    %c0_i32_0 = arith.constant 0 : i32
    %c0_i32_1 = arith.constant 0 : i32
    return %c0_i32, %c0_i32_0 : i32, i32
  }
  func.func @transform_6(%arg0: i32) -> (i32, i32) {
    %c0_i32 = arith.constant 0 : i32
    %c0_i32_0 = arith.constant 0 : i32
    %c0_i32_1 = arith.constant 0 : i32
    return %c0_i32, %c0_i32_0 : i32, i32
  }
  func.func @transform_7(%arg0: i32) -> (i32, i32) {
    %c0_i32 = arith.constant 0 : i32
    %c0_i32_0 = arith.constant 0 : i32
    return %c0_i32, %arg0 : i32, i32
  }
}

</mosaic_0001>

<bundles_post_ra>
// kernel: stochastic_projector_forward.1
= control target key start
LH: loop header
LB: loop body
LE: loop exit
PB: predicated region body
PF: predicated region fallthrough
CT: control target
= control target key end

     0   :  { %vm49_vm0 = vcmask 261120   ;;  %v173_v2 = vmov 0   ;;  %vm84_vm3 = vcmask 130048   ;;  %v174_v23 = vmov 8.0   ;;  %s249_s0 = inlined_call_operand.vmem [shape: f32[16,32], index: 0, kind: input, shape index: {}]   ;;  %s250_s2 = inlined_call_operand.vmem [shape: f32[16,1], index: 2, kind: input, shape index: {}]   ;;  %s251_s1 = inlined_call_operand.vmem [shape: bf16[16,32], index: 1, kind: input, shape index: {}]   ;;  %s252_s4 = inlined_call_operand.vmem [shape: f32[8,1], index: 4, kind: input, shape index: {}]   ;;  %s253_s6 = inlined_call_operand.vmem [shape: f32[8,1], index: 6, kind: input, shape index: {}]   ;;  %s254_s5 = inlined_call_operand.vmem [shape: f32[8,1], index: 5, kind: input, shape index: {}]   ;;  %s255_s3 = inlined_call_operand.vmem [shape: bf16[8,16], index: 3, kind: input, shape index: {}]   ;;  %s256_s7 = inlined_call_operand.vmem [shape: f32[8,16], index: 7, kind: output, shape index: {}]  }
   0x1   :  { %v27_v0 = vld [vmem:[%s249_s0] sm:$0xff]  ;;  %v28_v1 = vld [vmem:[%s249_s0 + $0x8] sm:$0xff]  ;;  %166 = vset.pattern.permute.xlu0 %v173_v2  ;;  %167 = vset.pattern.permute.xlu1 %v173_v2  ;;  %169 = vrcp.f32 %v174_v23 }
   0x2   :  { %v29_v3 = vpack.c.bf16 %v28_v1, %v27_v0  ;;  %v32_v4 = vld [vmem:[%s250_s2] sm:$0xff]  ;;  %168 = vset.pattern.permute.xlu2 %v173_v2  ;;  %v33_v7 = vld [vmem:[%s250_s2 + $0x8] sm:$0xff] }
   0x3   :  { %36 = vperm.xlu0 %166, %v32_v4   ;;  %v163_v6 = vld [vmem:[%s251_s1] sm:$0xff] }
   0x4   :  { %v54_v5 = vsel %vm49_vm0, %v29_v3, 0  ;;  %v78_v8 = vld [vmem:[%s252_s4] sm:$0xff] }
   0x5   :  { %63 = vmatpush.bf16.xpose.msra.mxu0 %v54_v5  ;;  %v145_v9 = vld [vmem:[%s253_s6] sm:$0xff]  ;;  %81 = vperm.xlu1 %167, %v78_v8  }
   0x6   :  { %148 = vperm.xlu2 %168, %v145_v9   ;;  %v138_v10 = vld [vmem:[%s254_s5] sm:$0xff] }
   0x7   :  { %v77_v22 = vld [vmem:[%s255_s3] sm:$0xf]  ;;  %v170_v24 = vpop.eup %169 }
   0x8   :  { %v109_v25 = vmul.f32 8.0, %v170_v24  ;;  %vm113_vm4 = vweird.f32 %v170_v24 }
   0xa   :  { %v110_v29 = vsub.f32 1.0, %v109_v25 }
   0xb   :  { %41 = vperm.xlu0 %166, %v33_v7  }
   0xc   :  { %161 = vmatmul.msk.bf16.vlgmr.msra.gmra.mxu0 %vm49_vm0, %v163_v6  ;;  %v111_v32 = vmul.f32 %v170_v24, %v110_v29 }
   0xd   :  { %141 = vperm.xlu1 %167, %v138_v10  }
   0xe   :  { %v112_v36 = vadd.f32 %v170_v24, %v111_v32 }
  0x10   :  { %v114_v39 = vsel %vm113_vm4, %v170_v24, %v112_v36 }
  0x60   :  { %v149_v62 = vpop.permute.xlu2 %148 }
  0x75   :  { %v37_v11 = vpop.permute.xlu0 %36 }
  0x77   :  { %v82_v26 = vpop.permute.xlu1 %81 }
  0x7d   :  { %v42_v14 = vpop.permute.xlu0 %41 }
  0x7f   :  { %v142_v61 = vpop.permute.xlu1 %141 }
  0x89   :  { %v65_v12 = vpop.f32.mrf.mxu0 }
  0x8a   :  { %v66_v13 = vadd.f32 %v65_v12, %v37_v11 }
  0x8c   :  { %v72_v16 = vmul.f32 0.01, %v66_v13  ;;  %vm70_vm1 = vcmp.ge.f32.partialorder %v66_v13, 0.0 }
  0x8e   :  { %v74_v19 = vsel %vm70_vm1, %v66_v13, %v72_v16 }
  0x91   :  { %v67_v15 = vpop.f32.mrf.mxu0 }
  0x92   :  { %v68_v17 = vadd.f32 %v67_v15, %v42_v14 }
  0x94   :  { %v73_v18 = vmul.f32 0.01, %v68_v17  ;;  %vm71_vm2 = vcmp.ge.f32.partialorder %v68_v17, 0.0 }
  0x96   :  { %v75_v20 = vsel %vm71_vm2, %v68_v17, %v73_v18 }
  0x97   :  { %v76_v21 = vpack.c.bf16 %v75_v20, %v74_v19 }
  0x99   :  { %95 = vmatpush.bf16.msra.mxu1 %v76_v21 }
  0x9c   :  { %162 = vmatmul.msk.bf16.vlgmr.msra.gmra.mxu1 %vm84_vm3, %v77_v22 }
 0x119   :  { %v97_v27 = vpop.f32.mrf.mxu1 }
 0x11a   :  { %v98_v28 = vadd.f32 %v97_v27, %v82_v26 }
 0x11c   :  { %v101_v30 = vsel %vm84_vm3, %v98_v28, 0.0 }
 0x11d   :  { %v102_v31 = vrot.slane %v101_v30, 4 }
 0x11f   :  { %v103_v33 = vadd.f32 %v102_v31, %v101_v30 }
 0x121   :  { %v104_v34 = vrot.slane %v103_v33, 2  ;;  %v99_v35 = vpop.f32.mrf.mxu1 }
 0x123   :  { %v105_v37 = vadd.f32 %v104_v34, %v103_v33 }
 0x125   :  { %v106_v38 = vrot.slane %v105_v37, 1 }
 0x127   :  { %v107_v40 = vadd.f32 %v106_v38, %v105_v37 }
 0x129   :  { %v115_v41 = vmul.f32 %v114_v39, %v107_v40 }
 0x12b   :  { %v116_v42 = vsub.f32 %v98_v28, %v115_v41 }
 0x12d   :  { %v117_v43 = vmul.f32 %v116_v42, %v116_v42 }
 0x12f   :  { %v118_v44 = vsel %vm84_vm3, %v117_v43, 0.0 }
 0x130   :  { %v119_v45 = vrot.slane %v118_v44, 4 }
 0x132   :  { %v120_v46 = vadd.f32 %v119_v45, %v118_v44 }
 0x134   :  { %v121_v47 = vrot.slane %v120_v46, 2 }
 0x136   :  { %v122_v48 = vadd.f32 %v121_v47, %v120_v46 }
 0x138   :  { %v123_v49 = vrot.slane %v122_v48, 1 }
 0x13a   :  { %v124_v50 = vadd.f32 %v123_v49, %v122_v48 }
 0x13c   :  { %v125_v51 = vmul.f32 %v124_v50, %v114_v39 }
 0x13e   :  { %v126_v52 = vadd.f32 1e-05, %v125_v51 }
 0x140   :  { %171 = vrsqrt.f32 %v126_v52  ;;  %vm133_vm6 = vweird.f32 %v126_v52 }
 0x146   :  { %v172_v53 = vpop.eup %171 }
 0x147   :  { %v128_v54 = vmul.f32 %v172_v53, %v126_v52  ;;  %vm134_vm5 = vweird.f32 %v172_v53 }
 0x148   :  { %vm135_vm7 = vmor %vm133_vm6, %vm134_vm5 }
 0x149   :  { %v129_v55 = vmul.f32 %v172_v53, %v128_v54 }
 0x14b   :  { %v130_v56 = vmul.f32 0.5, %v129_v55 }
 0x14d   :  { %v131_v57 = vsub.f32 1.5, %v130_v56 }
 0x14f   :  { %v132_v58 = vmul.f32 %v172_v53, %v131_v57 }
 0x151   :  { %v136_v59 = vsel %vm135_vm7, %v172_v53, %v132_v58 }
 0x152   :  { %v137_v60 = vmul.f32 %v136_v59, %v116_v42 }
 0x154   :  { %v144_v63 = vmul.f32 %v142_v61, %v137_v60 }
 0x156   :  { %v151_v0 = vadd.f32 %v149_v62, %v144_v63 }
 0x158   :  { %152 = vst.msk [vmem:[%s256_s7] sm:$0xff] %vm84_vm3, %v151_v0 }

</bundles_post_ra>
